<compile_context>
chip_gen: v5e
topology: v5e:2x2
jax: 0.10.0
libtpu: 0.0.40
codegen_flags: <defaults>
</compile_context>

<pallas_src>
import math
from functools import partial

import jax
import jax.numpy as jnp
from jax.experimental import pallas as pl
from jax.experimental.pallas import tpu as pltpu


def _round_up(x, m):
    return ((x + m - 1) // m) * m


def _rnn_kernel(x_ref, w1_ref, b1_ref, w2_ref, b2_ref, out_ref):
    # x_ref: (tile_r, P*n_in)  -- P samples packed per (lane-dense) row.
    # w1/w2 are block-diagonal packed weights, biases are (1, P*dim) rows.
    h = jnp.dot(x_ref[...], w1_ref[...], preferred_element_type=jnp.float32)
    h = jnp.maximum(h + b1_ref[...], 0.0)                       # relu
    out = jnp.dot(h, w2_ref[...], preferred_element_type=jnp.float32)
    out_ref[...] = out + b2_ref[...]                            # lane-dense store


def _choose_pack(n_in, n_neu, n_out):
    # Largest pack factor whose kron'ed weights still comfortably fit in VMEM.
    for pack in (16, 8, 4, 2, 1):
        big_bytes = pack * pack * (n_in * n_neu + n_neu * n_out) * 4
        if big_bytes <= 8 * 1024 * 1024:
            return pack
    return 1


@partial(jax.jit, static_argnames=("tile_rows",))
def custom_rnn_forward(x, input_weights, input_biases,
                       recurrent_weights, recurrent_biases,
                       output_weights, output_biases, *, tile_rows=None):
    """x: (N, n_inputs) float32. Returns (N, n_outputs) float32."""
    x = x.astype(jnp.float32)
    n_samples, n_in = x.shape
    n_neu = recurrent_weights.shape[0]
    n_out = output_weights.shape[1]

    w_in = input_weights.astype(jnp.float32)
    w_rec = recurrent_weights.astype(jnp.float32)
    w_out = output_weights.astype(jnp.float32)
    b_in = input_biases.astype(jnp.float32)
    b_rec = recurrent_biases.astype(jnp.float32)
    b_out = output_biases.astype(jnp.float32)

    # --- Fold the first two (bias-shifted) linear maps into one -------------
    #   (x + b_in) @ W_in @ W_rec + b_rec = x @ W_comb + b_comb
    w_comb = jnp.dot(w_in, w_rec, preferred_element_type=jnp.float32)   # (n_in, n_neu)
    b_comb = jnp.dot(jnp.dot(b_in, w_in), w_rec) + b_rec                # (n_neu,)

    P = _choose_pack(n_in, n_neu, n_out)        # samples packed per row (16 here)
    n_main = (n_samples // P) * P
    n_tail = n_samples - n_main

    outs = []

    if n_main > 0:
        R = n_main // P                          # packed rows fed to the kernel

        # Block-diagonal packed weights: act on P packed samples at once.
        eye = jnp.eye(P, dtype=jnp.float32)
        w1_big = jnp.kron(eye, w_comb)           # (P*n_in,  P*n_neu)
        w2_big = jnp.kron(eye, w_out)            # (P*n_neu, P*n_out)
        b1_big = jnp.tile(b_comb, P).reshape(1, P * n_neu)
        b2_big = jnp.tile(b_out, P).reshape(1, P * n_out)

        # Free row-major reshape (no copy when n_main == n_samples).
        x_p = x[:n_main].reshape(R, P * n_in)

        # --- Tile over packed rows ------------------------------------------
        # ~512 packed rows = 8192 samples per block; cap so the grid has >=2
        # steps (keeps both v7x TensorCores busy); ragged last block handled by
        # Pallas (OOB input rows are garbage but per-row independent, OOB output
        # rows are masked on store).
        if R <= 8:
            tile_r = R                            # single exact block
        else:
            tr = 512 if tile_rows is None else max(8, (int(tile_rows) // 8) * 8)
            tile_r = min(tr, _round_up(pl.cdiv(R, 2), 8))
        grid = (pl.cdiv(R, tile_r),)

        weight_bytes = (w1_big.size + w2_big.size + b1_big.size + b2_big.size) * 4
        cost = pl.CostEstimate(
            flops=2 * n_main * (n_in * n_neu + n_neu * n_out),
            transcendentals=0,
            bytes_accessed=n_main * (n_in + n_out) * 4 + weight_bytes,
        )

        out_p = pl.pallas_call(
            _rnn_kernel,
            out_shape=jax.ShapeDtypeStruct((R, P * n_out), jnp.float32),
            grid=grid,
            in_specs=[
                pl.BlockSpec((tile_r, P * n_in), lambda i: (i, 0)),      # streamed x
                pl.BlockSpec((P * n_in, P * n_neu), lambda i: (0, 0)),   # resident W1
                pl.BlockSpec((1, P * n_neu), lambda i: (0, 0)),
                pl.BlockSpec((P * n_neu, P * n_out), lambda i: (0, 0)),  # resident W2
                pl.BlockSpec((1, P * n_out), lambda i: (0, 0)),
            ],
            out_specs=pl.BlockSpec((tile_r, P * n_out), lambda i: (i, 0)),
            compiler_params=pltpu.CompilerParams(
                dimension_semantics=("parallel",),
                vmem_limit_bytes=32 * 1024 * 1024,   # actual use is a few MiB
            ),
            cost_estimate=cost,
        )(x_p, w1_big, b1_big, w2_big, b2_big)

        outs.append(out_p.reshape(n_main, n_out))   # free row-major un-pack

    if n_tail > 0:
        # <= P-1 leftover rows: plain jnp (fused under jit), avoids padding x.
        x_t = x[n_main:]
        h_t = jnp.maximum(jnp.dot(x_t, w_comb) + b_comb[None, :], 0.0)
        outs.append(jnp.dot(h_t, w_out) + b_out[None, :])

    return outs[0] if len(outs) == 1 else jnp.concatenate(outs, axis=0)


def _reference(x, w_in, b_in, w_rec, b_rec, w_out, b_out):
    inp = jnp.dot(x + b_in[None, :], w_in)
    h = jax.nn.relu(jnp.dot(inp, w_rec) + b_rec[None, :])
    return jnp.dot(h, w_out) + b_out[None, :]


if __name__ == "__main__":
    # Small shapes consistent with the module: external_input_tensor (N, n_inputs).
    n_samples, n_inputs, n_neurons, n_outputs = 128, 16, 32, 8

    key = jax.random.PRNGKey(0)
    k = jax.random.split(key, 7)
    u = lambda kk, shape: jax.random.uniform(kk, shape, jnp.float32, -0.01, 0.01)

    input_weights = u(k[0], (n_inputs, n_neurons))
    input_biases = u(k[1], (n_inputs,))
    recurrent_weights = u(k[2], (n_neurons, n_neurons))
    recurrent_biases = u(k[3], (n_neurons,))
    output_weights = u(k[4], (n_neurons, n_outputs))
    output_biases = u(k[5], (n_outputs,))

    x = jax.random.normal(k[6], (n_samples, n_inputs), jnp.float32)

    out = jax.block_until_ready(custom_rnn_forward(
        x, input_weights, input_biases, recurrent_weights, recurrent_biases,
        output_weights, output_biases))
    ref = _reference(x, input_weights, input_biases, recurrent_weights,
                     recurrent_biases, output_weights, output_biases)
    assert out.shape == (n_samples, n_outputs)
    assert jnp.allclose(out, ref, atol=1e-5, rtol=1e-5)

    # Ragged batch: exercises grid>1, the ragged (masked) last packed block and
    # the jnp tail path (200 % 16 == 8).
    x2 = jax.random.normal(jax.random.PRNGKey(1), (200, n_inputs), jnp.float32)
    out2 = jax.block_until_ready(custom_rnn_forward(
        x2, input_weights, input_biases, recurrent_weights, recurrent_biases,
        output_weights, output_biases, tile_rows=8))
    ref2 = _reference(x2, input_weights, input_biases, recurrent_weights,
                      recurrent_biases, output_weights, output_biases)
    assert out2.shape == (200, n_outputs)
    assert jnp.allclose(out2, ref2, atol=1e-5, rtol=1e-5)

    print("KERNEL_OK")
</pallas_src>

<mosaic_0001>
module attributes {stable_mosaic.version = 11 : i64} {
  func.func @_rnn_kernel(%arg0: i32, %arg1: memref<8x256xf32, #tpu.memory_space<vmem>>, %arg2: memref<256x512xf32, #tpu.memory_space<vmem>>, %arg3: memref<1x512xf32, #tpu.memory_space<vmem>>, %arg4: memref<512x128xf32, #tpu.memory_space<vmem>>, %arg5: memref<1x128xf32, #tpu.memory_space<vmem>>, %arg6: memref<8x128xf32, #tpu.memory_space<vmem>>) attributes {dimension_semantics = [#tpu.dimension_semantics<parallel>], iteration_bounds = array<i64: 1>, scalar_prefetch = 0 : i64, scratch_operands = 0 : i64, tpu.core_type = #tpu.core_type<tc>, window_params = [{transform_indices = @transform_0, window_bounds = array<i64: 8, 256>}, {pipeline_mode = #tpu.pipeline_mode<synchronous>, transform_indices = @transform_1, window_bounds = array<i64: 256, 512>}, {pipeline_mode = #tpu.pipeline_mode<synchronous>, transform_indices = @transform_2, window_bounds = array<i64: 1, 512>}, {pipeline_mode = #tpu.pipeline_mode<synchronous>, transform_indices = @transform_3, window_bounds = array<i64: 512, 128>}, {pipeline_mode = #tpu.pipeline_mode<synchronous>, transform_indices = @transform_4, window_bounds = array<i64: 1, 128>}, {transform_indices = @transform_5, window_bounds = array<i64: 8, 128>}]} {
    %c0 = arith.constant 0 : index
    %c0_0 = arith.constant 0 : index
    %0 = vector.load %arg1[%c0, %c0_0] : memref<8x256xf32, #tpu.memory_space<vmem>>, vector<8x256xf32>
    %c0_1 = arith.constant 0 : index
    %c0_2 = arith.constant 0 : index
    %1 = vector.load %arg2[%c0_1, %c0_2] : memref<256x512xf32, #tpu.memory_space<vmem>>, vector<256x512xf32>
    %cst = arith.constant dense<0.000000e+00> : vector<8x512xf32>
    %2 = tpu.matmul %0, %1, %cst {dimension_numbers = #tpu.dot_dimension_numbers<[1], [0], [0], [1], [0, 0, 1, 1], [], []>} : vector<8x256xf32>, vector<256x512xf32>, vector<8x512xf32> -> vector<8x512xf32>
    %c0_3 = arith.constant 0 : index
    %c0_4 = arith.constant 0 : index
    %3 = vector.load %arg3[%c0_3, %c0_4] : memref<1x512xf32, #tpu.memory_space<vmem>>, vector<1x512xf32>
    %4 = vector.broadcast %3 : vector<1x512xf32> to vector<8x512xf32>
    %5 = arith.addf %2, %4 : vector<8x512xf32>
    %cst_5 = arith.constant 0.000000e+00 : f32
    %6 = vector.broadcast %cst_5 : f32 to vector<8x512xf32>
    %7 = arith.maximumf %5, %6 : vector<8x512xf32>
    %c0_6 = arith.constant 0 : index
    %c0_7 = arith.constant 0 : index
    %8 = vector.load %arg4[%c0_6, %c0_7] : memref<512x128xf32, #tpu.memory_space<vmem>>, vector<512x128xf32>
    %cst_8 = arith.constant dense<0.000000e+00> : vector<8x128xf32>
    %9 = tpu.matmul %7, %8, %cst_8 {dimension_numbers = #tpu.dot_dimension_numbers<[1], [0], [0], [1], [0, 0, 1, 1], [], []>} : vector<8x512xf32>, vector<512x128xf32>, vector<8x128xf32> -> vector<8x128xf32>
    %c0_9 = arith.constant 0 : index
    %c0_10 = arith.constant 0 : index
    %10 = vector.load %arg5[%c0_9, %c0_10] : memref<1x128xf32, #tpu.memory_space<vmem>>, vector<1x128xf32>
    %11 = vector.broadcast %10 : vector<1x128xf32> to vector<8x128xf32>
    %12 = arith.addf %9, %11 : vector<8x128xf32>
    %c0_11 = arith.constant 0 : index
    %c0_12 = arith.constant 0 : index
    %13 = vector.load %arg6[%c0_11, %c0_12] : memref<8x128xf32, #tpu.memory_space<vmem>>, vector<8x128xf32>
    tpu.vector_store %arg6[%c0_11, %c0_12], %12 {strides = array<i32>} : memref<8x128xf32, #tpu.memory_space<vmem>>, vector<8x128xf32>,
    return
  }
  func.func @transform_0(%arg0: i32) -> (i32, i32) {
    %c0_i32 = arith.constant 0 : i32
    %c0_i32_0 = arith.constant 0 : i32
    return %arg0, %c0_i32 : i32, i32
  }
  func.func @transform_1(%arg0: i32) -> (i32, i32) {
    %c0_i32 = arith.constant 0 : i32
    %c0_i32_0 = arith.constant 0 : i32
    %c0_i32_1 = arith.constant 0 : i32
    return %c0_i32, %c0_i32_0 : i32, i32
  }
  func.func @transform_2(%arg0: i32) -> (i32, i32) {
    %c0_i32 = arith.constant 0 : i32
    %c0_i32_0 = arith.constant 0 : i32
    %c0_i32_1 = arith.constant 0 : i32
    return %c0_i32, %c0_i32_0 : i32, i32
  }
  func.func @transform_3(%arg0: i32) -> (i32, i32) {
    %c0_i32 = arith.constant 0 : i32
    %c0_i32_0 = arith.constant 0 : i32
    %c0_i32_1 = arith.constant 0 : i32
    return %c0_i32, %c0_i32_0 : i32, i32
  }
  func.func @transform_4(%arg0: i32) -> (i32, i32) {
    %c0_i32 = arith.constant 0 : i32
    %c0_i32_0 = arith.constant 0 : i32
    %c0_i32_1 = arith.constant 0 : i32
    return %c0_i32, %c0_i32_0 : i32, i32
  }
  func.func @transform_5(%arg0: i32) -> (i32, i32) {
    %c0_i32 = arith.constant 0 : i32
    %c0_i32_0 = arith.constant 0 : i32
    return %arg0, %c0_i32 : i32, i32
  }
}

</mosaic_0001>

<bundles_post_ra>
// kernel: tile.14
= control target key start
LH: loop header
LB: loop body
LE: loop exit
PB: predicated region body
PF: predicated region fallthrough
CT: control target
= control target key end

     0   :  { %s56_s8 = smov 96   ;;  %s57_s11 = smov 32   ;;  %vm3_vm0 = vcmask 261120   ;;  %vm9_vm1 = vcmask 1048320   ;;  %vm15_vm2 = vcmask 785920   ;;  %vm21_vm3 = vcmask 523520   ;;  %s93_s0 = inlined_call_operand.vmem [shape: f32[16,32], index: 0, kind: input, shape index: {}]   ;;  %s94_s1 = inlined_call_operand.vmem [shape: f32[1,512], index: 1, kind: output, shape index: {}]  }
   0x1   :  { %v47_v0 = vld [vmem:[%s93_s0 + $0x3] ss:$4 sm:$0xf]   ;;  %v49_v1 = vld [vmem:[%s93_s0 + $0x1] ss:$4 sm:$0xf]  }
   0x2   :  { %7 = vrot.lane.b32.xlu0 %v47_v0, %s56_s8  ;;  %19 = vrot.lane.b32.xlu1 %v49_v1, %s57_s11  ;;  %v48_v2 = vld [vmem:[%s93_s0 + $0x2] ss:$4 sm:$0xf]   ;;  %s58_s14 = smov 64  }
   0x3   :  { %v2_v3 = vld [vmem:[%s93_s0] ss:$4 sm:$0xf]  }
   0x4   :  { %4 = vst.msk [vmem:[#allocation0] ss:$8 sm:$0xf] %vm3_vm0, %v2_v3  }
   0xa   :  { %13 = vrot.lane.b32.xlu0 %v48_v2, %s58_s14 }
  0x74   :  { %v8_v4 = vpop.permute.xlu0 %7   ;;  %v20_v5 = vpop.permute.xlu1 %19  }
  0x75   :  { %10 = vst.msk [vmem:[#allocation0] ss:$8 sm:$0xf] %vm9_vm1, %v8_v4  }
  0x7c   :  { %v14_v6 = vpop.permute.xlu0 %13  }
  0x7d   :  { %16 = vst.msk [vmem:[#allocation0] ss:$8 sm:$0xf] %vm15_vm2, %v14_v6  }
  0x7e   :  { %22 = vst.msk [vmem:[#allocation0] ss:$8 sm:$0xf] %vm21_vm3, %v20_v5  }
  0x85   :  { %v25_v7 = vld [vmem:[#allocation0] sm:$0x1]  ;;  %v30_v8 = vld [vmem:[#allocation0 + $0x8] sm:$0x1]  ;;  %v36_v9 = vld [vmem:[#allocation0 + $0x10] sm:$0x1] }
  0x86   :  { %28 = vst [vmem:[%s94_s1] sm:$0x1] %v25_v7  ;;  %v42_v10 = vld [vmem:[#allocation0 + $0x18] sm:$0x1] }
  0x87   :  { %50 = vst [vmem:[%s94_s1 + $0x1] sm:$0x1] %v30_v8 }
  0x88   :  { %51 = vst [vmem:[%s94_s1 + $0x2] sm:$0x1] %v36_v9 }
  0x89   :  { %52 = vst [vmem:[%s94_s1 + $0x3] sm:$0x1] %v42_v10 }

// kernel: tile.13
= control target key start
LH: loop header
LB: loop body
LE: loop exit
PB: predicated region body
PF: predicated region fallthrough
CT: control target
= control target key end

     0   :  { %s28_s0 = inlined_call_operand.vmem [shape: f32[32], index: 0, kind: input, shape index: {}]   ;;  %s29_s1 = inlined_call_operand.vmem [shape: f32[16,32], index: 1, kind: output, shape index: {}]  }
   0x1   :  { %v4_v0 = vld [vmem:[%s28_s0] ss:$0 sm:$0xff] }
   0x2   :  { %5 = vst [vmem:[%s29_s1] sm:$0xff] %v4_v0 }
   0x3   :  { %8 = vst [vmem:[%s29_s1 + $0x8] sm:$0xff] %v4_v0 }

// kernel: tile.18
= control target key start
LH: loop header
LB: loop body
LE: loop exit
PB: predicated region body
PF: predicated region fallthrough
CT: control target
= control target key end

     0   :  { %s28_s0 = inlined_call_operand.vmem [shape: f32[8], index: 0, kind: input, shape index: {}]   ;;  %s29_s1 = inlined_call_operand.vmem [shape: f32[16,8], index: 1, kind: output, shape index: {}]  }
   0x1   :  { %v4_v0 = vld [vmem:[%s28_s0] ss:$0 sm:$0xff] }
   0x2   :  { %5 = vst [vmem:[%s29_s1] sm:$0xff] %v4_v0 }
   0x3   :  { %8 = vst [vmem:[%s29_s1 + $0x8] sm:$0xff] %v4_v0 }

// kernel: tile.19
= control target key start
LH: loop header
LB: loop body
LE: loop exit
PB: predicated region body
PF: predicated region fallthrough
CT: control target
= control target key end

     0   :  { %s131_s10 = smov 120   ;;  %s132_s11 = smov 104   ;;  %vm3_vm0 = vcmask 64512   ;;  %vm9_vm1 = vcmask 1048512   ;;  %vm15_vm2 = vcmask 982912   ;;  %vm21_vm3 = vcmask 917312   ;;  %s207_s0 = inlined_call_operand.vmem [shape: f32[16,8], index: 0, kind: input, shape index: {}]   ;;  %s208_s1 = inlined_call_operand.vmem [shape: f32[1,128], index: 1, kind: output, shape index: {}]  }
   0x1   :  { %v101_v0 = vld [vmem:[%s207_s0 + $0xf] sm:$0x1]   ;;  %v103_v1 = vld [vmem:[%s207_s0 + $0xd] sm:$0x1]   ;;  %v105_v2 = vld [vmem:[%s207_s0 + $0xb] sm:$0x1]  }
   0x2   :  { %7 = vrot.lane.b32.xlu0 %v101_v0, %s131_s10  ;;  %19 = vrot.lane.b32.xlu1 %v103_v1, %s132_s11  ;;  %s133_s14 = smov 88   ;;  %v102_v3 = vld [vmem:[%s207_s0 + $0xe] sm:$0x1]   ;;  %v104_v4 = vld [vmem:[%s207_s0 + $0xc] sm:$0x1]   ;;  %s134_s19 = smov 112  }
   0x3   :  { %31 = vrot.lane.b32.xlu2 %v105_v2, %s133_s14  ;;  %s135_s20 = smov 96   ;;  %v106_v5 = vld [vmem:[%s207_s0 + $0xa] sm:$0x1]   ;;  %s136_s23 = smov 80   ;;  %v107_v6 = vld [vmem:[%s207_s0 + $0x9] sm:$0x1]  }
   0x4   :  { %v108_v7 = vld [vmem:[%s207_s0 + $0x8] sm:$0x1]   ;;  %s137_s28 = smov 72   ;;  %s138_s29 = smov 64   ;;  %v109_v8 = vld [vmem:[%s207_s0 + $0x7] sm:$0x1]  }
   0x5   :  { %s139_s3 = smov 56   ;;  %v110_v9 = vld [vmem:[%s207_s0 + $0x6] sm:$0x1]   ;;  %v111_v10 = vld [vmem:[%s207_s0 + $0x5] sm:$0x1]   ;;  %s140_s8 = smov 48  }
   0x6   :  { %s141_s9 = smov 40   ;;  %v112_v11 = vld [vmem:[%s207_s0 + $0x4] sm:$0x1]   ;;  %s142_s12 = smov 32   ;;  %v113_v12 = vld [vmem:[%s207_s0 + $0x3] sm:$0x1]  }
   0x7   :  { %v114_v13 = vld [vmem:[%s207_s0 + $0x2] sm:$0x1]   ;;  %s143_s17 = smov 24   ;;  %s144_s18 = smov 16   ;;  %v115_v14 = vld [vmem:[%s207_s0 + $0x1] sm:$0x1]  }
   0x8   :  { %s145_s21 = smov 8   ;;  %v2_v15 = vld [vmem:[%s207_s0] sm:$0x1]   ;;  %vm27_vm4 = vcmask 851712   ;;  %vm33_vm5 = vcmask 786112   ;;  %vm39_vm6 = vcmask 720512  }
   0x9   :  { %4 = vst.msk [vmem:[#allocation0] sm:$0x1] %vm3_vm0, %v2_v15   ;;  %vm45_vm7 = vcmask 654912   ;;  %vm51_vm8 = vcmask 589312   ;;  %vm57_vm9 = vcmask 523712   ;;  %vm63_vm10 = vcmask 458112  }
   0xa   :  { %13 = vrot.lane.b32.xlu0 %v102_v3, %s134_s19  ;;  %25 = vrot.lane.b32.xlu1 %v104_v4, %s135_s20  ;;  %vm69_vm11 = vcmask 392512   ;;  %vm75_vm12 = vcmask 326912   ;;  %vm81_vm13 = vcmask 261312   ;;  %vm87_vm14 = vcmask 195712  }
   0xb   :  { %37 = vrot.lane.b32.xlu2 %v106_v5, %s136_s23  ;;  %vm93_vm15 = vcmask 130112  }
  0x12   :  { %43 = vrot.lane.b32.xlu0 %v107_v6, %s137_s28  ;;  %49 = vrot.lane.b32.xlu1 %v108_v7, %s138_s29 }
  0x13   :  { %55 = vrot.lane.b32.xlu2 %v109_v8, %s139_s3 }
  0x1a   :  { %61 = vrot.lane.b32.xlu0 %v110_v9, %s140_s8  ;;  %67 = vrot.lane.b32.xlu1 %v111_v10, %s141_s9 }
  0x1b   :  { %73 = vrot.lane.b32.xlu2 %v112_v11, %s142_s12 }
  0x22   :  { %79 = vrot.lane.b32.xlu0 %v113_v12, %s143_s17  ;;  %85 = vrot.lane.b32.xlu1 %v114_v13, %s144_s18 }
  0x23   :  { %91 = vrot.lane.b32.xlu2 %v115_v14, %s145_s21 }
  0x5d   :  { %v32_v16 = vpop.permute.xlu2 %31  }
  0x65   :  { %v38_v17 = vpop.permute.xlu2 %37  }
  0x6d   :  { %v56_v18 = vpop.permute.xlu2 %55  }
  0x74   :  { %v8_v19 = vpop.permute.xlu0 %7   ;;  %v20_v20 = vpop.permute.xlu1 %19  }
  0x75   :  { %10 = vst.msk [vmem:[#allocation0] sm:$0x1] %vm9_vm1, %v8_v19   ;;  %v74_v21 = vpop.permute.xlu2 %73  }
  0x7c   :  { %v14_v22 = vpop.permute.xlu0 %13   ;;  %v26_v23 = vpop.permute.xlu1 %25  }
  0x7d   :  { %16 = vst.msk [vmem:[#allocation0] sm:$0x1] %vm15_vm2, %v14_v22   ;;  %v92_v24 = vpop.permute.xlu2 %91  }
  0x7e   :  { %22 = vst.msk [vmem:[#allocation0] sm:$0x1] %vm21_vm3, %v20_v20  }
  0x7f   :  { %28 = vst.msk [vmem:[#allocation0] sm:$0x1] %vm27_vm4, %v26_v23  }
  0x80   :  { %34 = vst.msk [vmem:[#allocation0] sm:$0x1] %vm33_vm5, %v32_v16  }
  0x81   :  { %40 = vst.msk [vmem:[#allocation0] sm:$0x1] %vm39_vm6, %v38_v17  }
  0x84   :  { %v44_v25 = vpop.permute.xlu0 %43   ;;  %v50_v26 = vpop.permute.xlu1 %49  }
  0x85   :  { %46 = vst.msk [vmem:[#allocation0] sm:$0x1] %vm45_vm7, %v44_v25  }
  0x86   :  { %52 = vst.msk [vmem:[#allocation0] sm:$0x1] %vm51_vm8, %v50_v26  }
  0x87   :  { %58 = vst.msk [vmem:[#allocation0] sm:$0x1] %vm57_vm9, %v56_v18  }
  0x8c   :  { %v62_v27 = vpop.permute.xlu0 %61   ;;  %v68_v28 = vpop.permute.xlu1 %67  }
  0x8d   :  { %64 = vst.msk [vmem:[#allocation0] sm:$0x1] %vm63_vm10, %v62_v27  }
  0x8e   :  { %70 = vst.msk [vmem:[#allocation0] sm:$0x1] %vm69_vm11, %v68_v28  }
  0x8f   :  { %76 = vst.msk [vmem:[#allocation0] sm:$0x1] %vm75_vm12, %v74_v21  }
  0x94   :  { %v80_v29 = vpop.permute.xlu0 %79   ;;  %v86_v30 = vpop.permute.xlu1 %85  }
  0x95   :  { %82 = vst.msk [vmem:[#allocation0] sm:$0x1] %vm81_vm13, %v80_v29  }
  0x96   :  { %88 = vst.msk [vmem:[#allocation0] sm:$0x1] %vm87_vm14, %v86_v30  }
  0x97   :  { %94 = vst.msk [vmem:[#allocation0] sm:$0x1] %vm93_vm15, %v92_v24  }
  0x9e   :  { %v97_v31 = vld [vmem:[#allocation0] sm:$0x1] }
  0x9f   :  { %100 = vst [vmem:[%s208_s1] sm:$0x1] %v97_v31 }

// kernel: custom_rnn_forward.1
= control target key start
LH: loop header
LB: loop body
LE: loop exit
PB: predicated region body
PF: predicated region fallthrough
CT: control target
= control target key end

     0   :  { %s1099_s1 = inlined_call_operand.vmem [shape: f32[256,512], index: 1, kind: input, shape index: {}]   ;;  %s1100_s0 = inlined_call_operand.vmem [shape: f32[8,256], index: 0, kind: input, shape index: {}]   ;;  %s1101_s3 = inlined_call_operand.vmem [shape: f32[512,128], index: 3, kind: input, shape index: {}]   ;;  %s1102_s4 = inlined_call_operand.vmem [shape: f32[1,128], index: 4, kind: input, shape index: {}]   ;;  %s1103_s2 = inlined_call_operand.vmem [shape: f32[1,512], index: 2, kind: input, shape index: {}]   ;;  %s1104_s5 = inlined_call_operand.vmem [shape: f32[8,128], index: 5, kind: output, shape index: {}]  }
   0x1   :  { %v82_v0 = vld [vmem:[%s1099_s1 + $0x1e0] sm:$0xff]  ;;  %v83_v1 = vld [vmem:[%s1099_s1 + $0x1e8] sm:$0xff]  ;;  %v84_v62 = vld [vmem:[%s1099_s1 + $0x1f0] sm:$0xff] }
   0x2   :  { %v78_v2 = vld [vmem:[%s1099_s1 + $0x1c0] sm:$0xff]  ;;  %160 = vmatpush.msra.mxu0 %v82_v0  ;;  %200 = vmatpush.msra.mxu2 %v83_v1  ;;  %v79_v4 = vld [vmem:[%s1099_s1 + $0x1c8] sm:$0xff]  ;;  %v85_v63 = vld [vmem:[%s1099_s1 + $0x1f8] sm:$0xff] }
   0x3   :  { %v146_v3 = vld [vmem:[%s1099_s1 + $0x3e0] sm:$0xff]  ;;  %v147_v5 = vld [vmem:[%s1099_s1 + $0x3e8] sm:$0xff] }
   0x4   :  { %180 = vmatpush.msra.mxu1 %v146_v3  ;;  %220 = vmatpush.msra.mxu3 %v147_v5  ;;  %v74_v6 = vld [vmem:[%s1099_s1 + $0x1a0] sm:$0xff]  ;;  %v75_v8 = vld [vmem:[%s1099_s1 + $0x1a8] sm:$0xff]  ;;  %v148_v3 = vld [vmem:[%s1099_s1 + $0x3f0] sm:$0xff] }
   0x5   :  { %v142_v7 = vld [vmem:[%s1099_s1 + $0x3c0] sm:$0xff]  ;;  %161 = vmatpush.msra.mxu0 %v78_v2  ;;  %201 = vmatpush.msra.mxu2 %v79_v4  ;;  %v143_v9 = vld [vmem:[%s1099_s1 + $0x3c8] sm:$0xff]  ;;  %v80_v2 = vld [vmem:[%s1099_s1 + $0x1d0] sm:$0xff] }
   0x6   :  { %v138_v10 = vld [vmem:[%s1099_s1 + $0x3a0] sm:$0xff]  ;;  %181 = vmatpush.msra.mxu1 %v142_v7  ;;  %221 = vmatpush.msra.mxu3 %v143_v9  ;;  %v71_v12 = vld [vmem:[%s1099_s1 + $0x188] sm:$0xff]  ;;  %v81_v4 = vld [vmem:[%s1099_s1 + $0x1d8] sm:$0xff] }
   0x7   :  { %v70_v11 = vld [vmem:[%s1099_s1 + $0x180] sm:$0xff]  ;;  %v139_v13 = vld [vmem:[%s1099_s1 + $0x3a8] sm:$0xff]  ;;  %162 = vmatpush.msra.mxu0 %v74_v6  ;;  %202 = vmatpush.msra.mxu2 %v75_v8  ;;  %v149_v5 = vld [vmem:[%s1099_s1 + $0x3f8] sm:$0xff] }
   0x8   :  { %v134_v14 = vld [vmem:[%s1099_s1 + $0x380] sm:$0xff]  ;;  %v135_v15 = vld [vmem:[%s1099_s1 + $0x388] sm:$0xff]  ;;  %182 = vmatpush.msra.mxu1 %v138_v10  ;;  %222 = vmatpush.msra.mxu3 %v139_v13  ;;  %v76_v6 = vld [vmem:[%s1099_s1 + $0x1b0] sm:$0xff] }
   0x9   :  { %v66_v16 = vld [vmem:[%s1099_s1 + $0x160] sm:$0xff]  ;;  %v67_v17 = vld [vmem:[%s1099_s1 + $0x168] sm:$0xff]  ;;  %163 = vmatpush.msra.mxu0 %v70_v11  ;;  %203 = vmatpush.msra.mxu2 %v71_v12  ;;  %v144_v7 = vld [vmem:[%s1099_s1 + $0x3d0] sm:$0xff] }
   0xa   :  { %v130_v18 = vld [vmem:[%s1099_s1 + $0x360] sm:$0xff]  ;;  %v131_v19 = vld [vmem:[%s1099_s1 + $0x368] sm:$0xff]  ;;  %183 = vmatpush.msra.mxu1 %v134_v14  ;;  %223 = vmatpush.msra.mxu3 %v135_v15  ;;  %v77_v8 = vld [vmem:[%s1099_s1 + $0x1b8] sm:$0xff] }
   0xb   :  { %v62_v20 = vld [vmem:[%s1099_s1 + $0x140] sm:$0xff]  ;;  %v63_v21 = vld [vmem:[%s1099_s1 + $0x148] sm:$0xff]  ;;  %164 = vmatpush.msra.mxu0 %v66_v16  ;;  %204 = vmatpush.msra.mxu2 %v67_v17  ;;  %v145_v9 = vld [vmem:[%s1099_s1 + $0x3d8] sm:$0xff] }
   0xc   :  { %v126_v22 = vld [vmem:[%s1099_s1 + $0x340] sm:$0xff]  ;;  %v127_v23 = vld [vmem:[%s1099_s1 + $0x348] sm:$0xff]  ;;  %184 = vmatpush.msra.mxu1 %v130_v18  ;;  %224 = vmatpush.msra.mxu3 %v131_v19  ;;  %v72_v10 = vld [vmem:[%s1099_s1 + $0x190] sm:$0xff] }
   0xd   :  { %v58_v24 = vld [vmem:[%s1099_s1 + $0x120] sm:$0xff]  ;;  %v59_v25 = vld [vmem:[%s1099_s1 + $0x128] sm:$0xff]  ;;  %165 = vmatpush.msra.mxu0 %v62_v20  ;;  %205 = vmatpush.msra.mxu2 %v63_v21  ;;  %v140_v11 = vld [vmem:[%s1099_s1 + $0x3b0] sm:$0xff] }
   0xe   :  { %v122_v26 = vld [vmem:[%s1099_s1 + $0x320] sm:$0xff]  ;;  %v123_v27 = vld [vmem:[%s1099_s1 + $0x328] sm:$0xff]  ;;  %185 = vmatpush.msra.mxu1 %v126_v22  ;;  %225 = vmatpush.msra.mxu3 %v127_v23  ;;  %v73_v12 = vld [vmem:[%s1099_s1 + $0x198] sm:$0xff] }
   0xf   :  { %v54_v28 = vld [vmem:[%s1099_s1 + $0x100] sm:$0xff]  ;;  %v55_v29 = vld [vmem:[%s1099_s1 + $0x108] sm:$0xff]  ;;  %166 = vmatpush.msra.mxu0 %v58_v24  ;;  %206 = vmatpush.msra.mxu2 %v59_v25  ;;  %v141_v13 = vld [vmem:[%s1099_s1 + $0x3b8] sm:$0xff] }
  0x10   :  { %v118_v30 = vld [vmem:[%s1099_s1 + $0x300] sm:$0xff]  ;;  %v119_v31 = vld [vmem:[%s1099_s1 + $0x308] sm:$0xff]  ;;  %186 = vmatpush.msra.mxu1 %v122_v26  ;;  %226 = vmatpush.msra.mxu3 %v123_v27  ;;  %v68_v14 = vld [vmem:[%s1099_s1 + $0x170] sm:$0xff] }
  0x11   :  { %v50_v32 = vld [vmem:[%s1099_s1 + $0xe0] sm:$0xff]  ;;  %v51_v33 = vld [vmem:[%s1099_s1 + $0xe8] sm:$0xff]  ;;  %167 = vmatpush.msra.mxu0 %v54_v28  ;;  %207 = vmatpush.msra.mxu2 %v55_v29  ;;  %v136_v15 = vld [vmem:[%s1099_s1 + $0x390] sm:$0xff] }
  0x12   :  { %v114_v34 = vld [vmem:[%s1099_s1 + $0x2e0] sm:$0xff]  ;;  %v115_v35 = vld [vmem:[%s1099_s1 + $0x2e8] sm:$0xff]  ;;  %187 = vmatpush.msra.mxu1 %v118_v30  ;;  %227 = vmatpush.msra.mxu3 %v119_v31  ;;  %v69_v16 = vld [vmem:[%s1099_s1 + $0x178] sm:$0xff] }
  0x13   :  { %v46_v36 = vld [vmem:[%s1099_s1 + $0xc0] sm:$0xff]  ;;  %v47_v37 = vld [vmem:[%s1099_s1 + $0xc8] sm:$0xff]  ;;  %168 = vmatpush.msra.mxu0 %v50_v32  ;;  %208 = vmatpush.msra.mxu2 %v51_v33  ;;  %v137_v17 = vld [vmem:[%s1099_s1 + $0x398] sm:$0xff] }
  0x14   :  { %v110_v38 = vld [vmem:[%s1099_s1 + $0x2c0] sm:$0xff]  ;;  %v111_v39 = vld [vmem:[%s1099_s1 + $0x2c8] sm:$0xff]  ;;  %188 = vmatpush.msra.mxu1 %v114_v34  ;;  %228 = vmatpush.msra.mxu3 %v115_v35  ;;  %v64_v18 = vld [vmem:[%s1099_s1 + $0x150] sm:$0xff] }
  0x15   :  { %v42_v40 = vld [vmem:[%s1099_s1 + $0xa0] sm:$0xff]  ;;  %v43_v41 = vld [vmem:[%s1099_s1 + $0xa8] sm:$0xff]  ;;  %169 = vmatpush.msra.mxu0 %v46_v36  ;;  %209 = vmatpush.msra.mxu2 %v47_v37  ;;  %v132_v19 = vld [vmem:[%s1099_s1 + $0x370] sm:$0xff] }
  0x16   :  { %v106_v42 = vld [vmem:[%s1099_s1 + $0x2a0] sm:$0xff]  ;;  %v107_v43 = vld [vmem:[%s1099_s1 + $0x2a8] sm:$0xff]  ;;  %189 = vmatpush.msra.mxu1 %v110_v38  ;;  %229 = vmatpush.msra.mxu3 %v111_v39  ;;  %v65_v20 = vld [vmem:[%s1099_s1 + $0x158] sm:$0xff] }
  0x17   :  { %v38_v44 = vld [vmem:[%s1099_s1 + $0x80] sm:$0xff]  ;;  %v39_v45 = vld [vmem:[%s1099_s1 + $0x88] sm:$0xff]  ;;  %170 = vmatpush.msra.mxu0 %v42_v40  ;;  %210 = vmatpush.msra.mxu2 %v43_v41  ;;  %v133_v21 = vld [vmem:[%s1099_s1 + $0x378] sm:$0xff] }
  0x18   :  { %v102_v46 = vld [vmem:[%s1099_s1 + $0x280] sm:$0xff]  ;;  %v103_v47 = vld [vmem:[%s1099_s1 + $0x288] sm:$0xff]  ;;  %190 = vmatpush.msra.mxu1 %v106_v42  ;;  %230 = vmatpush.msra.mxu3 %v107_v43  ;;  %v60_v22 = vld [vmem:[%s1099_s1 + $0x130] sm:$0xff] }
  0x19   :  { %v34_v48 = vld [vmem:[%s1099_s1 + $0x60] sm:$0xff]  ;;  %v35_v49 = vld [vmem:[%s1099_s1 + $0x68] sm:$0xff]  ;;  %171 = vmatpush.msra.mxu0 %v38_v44  ;;  %211 = vmatpush.msra.mxu2 %v39_v45  ;;  %v128_v23 = vld [vmem:[%s1099_s1 + $0x350] sm:$0xff] }
  0x1a   :  { %v98_v50 = vld [vmem:[%s1099_s1 + $0x260] sm:$0xff]  ;;  %v99_v51 = vld [vmem:[%s1099_s1 + $0x268] sm:$0xff]  ;;  %191 = vmatpush.msra.mxu1 %v102_v46  ;;  %231 = vmatpush.msra.mxu3 %v103_v47  ;;  %v61_v24 = vld [vmem:[%s1099_s1 + $0x138] sm:$0xff] }
  0x1b   :  { %v30_v52 = vld [vmem:[%s1099_s1 + $0x40] sm:$0xff]  ;;  %v31_v53 = vld [vmem:[%s1099_s1 + $0x48] sm:$0xff]  ;;  %172 = vmatpush.msra.mxu0 %v34_v48  ;;  %212 = vmatpush.msra.mxu2 %v35_v49  ;;  %v129_v25 = vld [vmem:[%s1099_s1 + $0x358] sm:$0xff] }
  0x1c   :  { %v94_v54 = vld [vmem:[%s1099_s1 + $0x240] sm:$0xff]  ;;  %v95_v55 = vld [vmem:[%s1099_s1 + $0x248] sm:$0xff]  ;;  %192 = vmatpush.msra.mxu1 %v98_v50  ;;  %232 = vmatpush.msra.mxu3 %v99_v51  ;;  %v56_v26 = vld [vmem:[%s1099_s1 + $0x110] sm:$0xff] }
  0x1d   :  { %v26_v56 = vld [vmem:[%s1099_s1 + $0x20] sm:$0xff]  ;;  %v27_v57 = vld [vmem:[%s1099_s1 + $0x28] sm:$0xff]  ;;  %173 = vmatpush.msra.mxu0 %v30_v52  ;;  %213 = vmatpush.msra.mxu2 %v31_v53  ;;  %v124_v27 = vld [vmem:[%s1099_s1 + $0x330] sm:$0xff] }
  0x1e   :  { %v90_v58 = vld [vmem:[%s1099_s1 + $0x220] sm:$0xff]  ;;  %v91_v59 = vld [vmem:[%s1099_s1 + $0x228] sm:$0xff]  ;;  %193 = vmatpush.msra.mxu1 %v94_v54  ;;  %233 = vmatpush.msra.mxu3 %v95_v55  ;;  %v57_v28 = vld [vmem:[%s1099_s1 + $0x118] sm:$0xff] }
  0x1f   :  { %v22_v60 = vld [vmem:[%s1099_s1] sm:$0xff]  ;;  %v23_v61 = vld [vmem:[%s1099_s1 + $0x8] sm:$0xff]  ;;  %174 = vmatpush.msra.mxu0 %v26_v56  ;;  %214 = vmatpush.msra.mxu2 %v27_v57  ;;  %v125_v29 = vld [vmem:[%s1099_s1 + $0x338] sm:$0xff] }
  0x20   :  { %194 = vmatpush.msra.mxu1 %v90_v58  ;;  %234 = vmatpush.msra.mxu3 %v91_v59  ;;  %v86_v0 = vld [vmem:[%s1099_s1 + $0x200] sm:$0xff]  ;;  %v87_v1 = vld [vmem:[%s1099_s1 + $0x208] sm:$0xff]  ;;  %v52_v30 = vld [vmem:[%s1099_s1 + $0xf0] sm:$0xff] }
  0x21   :  { %175 = vmatpush.msra.mxu0 %v22_v60  ;;  %215 = vmatpush.msra.mxu2 %v23_v61  ;;  %v120_v31 = vld [vmem:[%s1099_s1 + $0x310] sm:$0xff]  ;;  %v53_v32 = vld [vmem:[%s1099_s1 + $0xf8] sm:$0xff]  ;;  %v20_v46 = vld [vmem:[%s1100_s0] sm:$0xff] }
  0x22   :  { %195 = vmatpush.msra.mxu1 %v86_v0  ;;  %235 = vmatpush.msra.mxu3 %v87_v1  ;;  %v121_v33 = vld [vmem:[%s1099_s1 + $0x318] sm:$0xff]  ;;  %v48_v34 = vld [vmem:[%s1099_s1 + $0xd0] sm:$0xff]  ;;  %v21_v51 = vld [vmem:[%s1100_s0 + $0x8] sm:$0xff] }
  0x23   :  { %240 = vmatpush.msrb.mxu0 %v84_v62  ;;  %280 = vmatpush.msrb.mxu2 %v85_v63  ;;  %v116_v35 = vld [vmem:[%s1099_s1 + $0x2f0] sm:$0xff]  ;;  %v49_v36 = vld [vmem:[%s1099_s1 + $0xd8] sm:$0xff] }
  0x24   :  { %260 = vmatpush.msrb.mxu1 %v148_v3  ;;  %300 = vmatpush.msrb.mxu3 %v149_v5  ;;  %v117_v37 = vld [vmem:[%s1099_s1 + $0x2f8] sm:$0xff]  ;;  %v44_v38 = vld [vmem:[%s1099_s1 + $0xb0] sm:$0xff] }
  0x25   :  { %241 = vmatpush.msrb.mxu0 %v80_v2  ;;  %281 = vmatpush.msrb.mxu2 %v81_v4  ;;  %v112_v39 = vld [vmem:[%s1099_s1 + $0x2d0] sm:$0xff]  ;;  %v45_v40 = vld [vmem:[%s1099_s1 + $0xb8] sm:$0xff] }
  0x26   :  { %261 = vmatpush.msrb.mxu1 %v144_v7  ;;  %301 = vmatpush.msrb.mxu3 %v145_v9  ;;  %v113_v41 = vld [vmem:[%s1099_s1 + $0x2d8] sm:$0xff]  ;;  %v40_v42 = vld [vmem:[%s1099_s1 + $0x90] sm:$0xff] }
  0x27   :  { %242 = vmatpush.msrb.mxu0 %v76_v6  ;;  %282 = vmatpush.msrb.mxu2 %v77_v8  ;;  %v108_v43 = vld [vmem:[%s1099_s1 + $0x2b0] sm:$0xff]  ;;  %v41_v44 = vld [vmem:[%s1099_s1 + $0x98] sm:$0xff] }
  0x28   :  { %262 = vmatpush.msrb.mxu1 %v140_v11  ;;  %302 = vmatpush.msrb.mxu3 %v141_v13  ;;  %v109_v45 = vld [vmem:[%s1099_s1 + $0x2b8] sm:$0xff]  ;;  %v36_v47 = vld [vmem:[%s1099_s1 + $0x70] sm:$0xff]  ;;  %v353_v11 = vld [vmem:[%s1101_s3 + $0xe8] sm:$0xff] }
  0x29   :  { %243 = vmatpush.msrb.mxu0 %v72_v10  ;;  %283 = vmatpush.msrb.mxu2 %v73_v12  ;;  %v104_v48 = vld [vmem:[%s1099_s1 + $0x290] sm:$0xff]  ;;  %v37_v49 = vld [vmem:[%s1099_s1 + $0x78] sm:$0xff]  ;;  %v337_v10 = vld [vmem:[%s1101_s3 + $0x68] sm:$0xff] }
  0x2a   :  { %263 = vmatpush.msrb.mxu1 %v136_v15  ;;  %303 = vmatpush.msrb.mxu3 %v137_v17  ;;  %v105_v50 = vld [vmem:[%s1099_s1 + $0x298] sm:$0xff]  ;;  %v32_v52 = vld [vmem:[%s1099_s1 + $0x50] sm:$0xff]  ;;  %v369_v12 = vld [vmem:[%s1101_s3 + $0x168] sm:$0xff] }
  0x2b   :  { %244 = vmatpush.msrb.mxu0 %v68_v14  ;;  %284 = vmatpush.msrb.mxu2 %v69_v16  ;;  %v100_v53 = vld [vmem:[%s1099_s1 + $0x270] sm:$0xff]  ;;  %v33_v54 = vld [vmem:[%s1099_s1 + $0x58] sm:$0xff]  ;;  %v385_v13 = vld [vmem:[%s1101_s3 + $0x1e8] sm:$0xff] }
  0x2c   :  { %264 = vmatpush.msrb.mxu1 %v132_v19  ;;  %304 = vmatpush.msrb.mxu3 %v133_v21  ;;  %v101_v55 = vld [vmem:[%s1099_s1 + $0x278] sm:$0xff]  ;;  %v28_v56 = vld [vmem:[%s1099_s1 + $0x30] sm:$0xff]  ;;  %v336_v14 = vld [vmem:[%s1101_s3 + $0x60] sm:$0xff] }
  0x2d   :  { %245 = vmatpush.msrb.mxu0 %v64_v18  ;;  %285 = vmatpush.msrb.mxu2 %v65_v20  ;;  %v96_v57 = vld [vmem:[%s1099_s1 + $0x250] sm:$0xff]  ;;  %v29_v58 = vld [vmem:[%s1099_s1 + $0x38] sm:$0xff]  ;;  %v352_v15 = vld [vmem:[%s1101_s3 + $0xe0] sm:$0xff] }
  0x2e   :  { %265 = vmatpush.msrb.mxu1 %v128_v23  ;;  %305 = vmatpush.msrb.mxu3 %v129_v25  ;;  %v97_v59 = vld [vmem:[%s1099_s1 + $0x258] sm:$0xff]  ;;  %v24_v60 = vld [vmem:[%s1099_s1 + $0x10] sm:$0xff]  ;;  %v368_v16 = vld [vmem:[%s1101_s3 + $0x160] sm:$0xff] }
  0x2f   :  { %246 = vmatpush.msrb.mxu0 %v60_v22  ;;  %286 = vmatpush.msrb.mxu2 %v61_v24  ;;  %v92_v61 = vld [vmem:[%s1099_s1 + $0x230] sm:$0xff]  ;;  %v25_v62 = vld [vmem:[%s1099_s1 + $0x18] sm:$0xff]  ;;  %v384_v17 = vld [vmem:[%s1101_s3 + $0x1e0] sm:$0xff] }
  0x30   :  { %266 = vmatpush.msrb.mxu1 %v124_v27  ;;  %306 = vmatpush.msrb.mxu3 %v125_v29  ;;  %v93_v63 = vld [vmem:[%s1099_s1 + $0x238] sm:$0xff]  ;;  %v88_v0 = vld [vmem:[%s1099_s1 + $0x210] sm:$0xff]  ;;  %v333_v25 = vld [vmem:[%s1101_s3 + $0x48] sm:$0xff] }
  0x31   :  { %247 = vmatpush.msrb.mxu0 %v56_v26  ;;  %287 = vmatpush.msrb.mxu2 %v57_v28  ;;  %v89_v1 = vld [vmem:[%s1099_s1 + $0x218] sm:$0xff]  ;;  %v338_v6 = vld [vmem:[%s1101_s3 + $0x70] sm:$0xff]  ;;  %v349_v26 = vld [vmem:[%s1101_s3 + $0xc8] sm:$0xff] }
  0x32   :  { %267 = vmatpush.msrb.mxu1 %v120_v31  ;;  %307 = vmatpush.msrb.mxu3 %v121_v33  ;;  %v339_v2 = vld [vmem:[%s1101_s3 + $0x78] sm:$0xff]  ;;  %v354_v7 = vld [vmem:[%s1101_s3 + $0xf0] sm:$0xff]  ;;  %v365_v27 = vld [vmem:[%s1101_s3 + $0x148] sm:$0xff] }
  0x33   :  { %248 = vmatpush.msrb.mxu0 %v52_v30  ;;  %288 = vmatpush.msrb.mxu2 %v53_v32  ;;  %v355_v3 = vld [vmem:[%s1101_s3 + $0xf8] sm:$0xff]  ;;  %v370_v8 = vld [vmem:[%s1101_s3 + $0x170] sm:$0xff]  ;;  %v332_v28 = vld [vmem:[%s1101_s3 + $0x40] sm:$0xff] }
  0x34   :  { %268 = vmatpush.msrb.mxu1 %v116_v35  ;;  %308 = vmatpush.msrb.mxu3 %v117_v37  ;;  %v371_v4 = vld [vmem:[%s1101_s3 + $0x178] sm:$0xff]  ;;  %v386_v9 = vld [vmem:[%s1101_s3 + $0x1f0] sm:$0xff]  ;;  %v348_v29 = vld [vmem:[%s1101_s3 + $0xc0] sm:$0xff] }
  0x35   :  { %249 = vmatpush.msrb.mxu0 %v48_v34  ;;  %289 = vmatpush.msrb.mxu2 %v49_v36  ;;  %v387_v5 = vld [vmem:[%s1101_s3 + $0x1f8] sm:$0xff]  ;;  %v334_v22 = vld [vmem:[%s1101_s3 + $0x50] sm:$0xff]  ;;  %v364_v30 = vld [vmem:[%s1101_s3 + $0x140] sm:$0xff] }
  0x36   :  { %269 = vmatpush.msrb.mxu1 %v112_v39  ;;  %309 = vmatpush.msrb.mxu3 %v113_v41  ;;  %v335_v18 = vld [vmem:[%s1101_s3 + $0x58] sm:$0xff]  ;;  %v350_v23 = vld [vmem:[%s1101_s3 + $0xd0] sm:$0xff]  ;;  %v329_v34 = vld [vmem:[%s1101_s3 + $0x28] sm:$0xff] }
  0x37   :  { %250 = vmatpush.msrb.mxu0 %v44_v38  ;;  %290 = vmatpush.msrb.mxu2 %v45_v40  ;;  %v351_v19 = vld [vmem:[%s1101_s3 + $0xd8] sm:$0xff]  ;;  %v366_v24 = vld [vmem:[%s1101_s3 + $0x150] sm:$0xff]  ;;  %v328_v38 = vld [vmem:[%s1101_s3 + $0x20] sm:$0xff] }
  0x38   :  { %270 = vmatpush.msrb.mxu1 %v108_v43  ;;  %310 = vmatpush.msrb.mxu3 %v109_v45  ;;  %v367_v20 = vld [vmem:[%s1101_s3 + $0x158] sm:$0xff]  ;;  %v330_v33 = vld [vmem:[%s1101_s3 + $0x30] sm:$0xff]  ;;  %v345_v39 = vld [vmem:[%s1101_s3 + $0xa8] sm:$0xff] }
  0x39   :  { %251 = vmatpush.msrb.mxu0 %v40_v42  ;;  %291 = vmatpush.msrb.mxu2 %v41_v44  ;;  %v383_v21 = vld [vmem:[%s1101_s3 + $0x1d8] sm:$0xff]  ;;  %v346_v35 = vld [vmem:[%s1101_s3 + $0xb0] sm:$0xff]  ;;  %v381_v41 = vld [vmem:[%s1101_s3 + $0x1c8] sm:$0xff] }
  0x3a   :  { %176 = vmatmul.f32.vlgmr.msra.gmra.mxu0 %v20_v46  ;;  %216 = vmatmul.f32.vlgmr.msra.gmra.mxu2 %v20_v46  ;;  %v331_v31 = vld [vmem:[%s1101_s3 + $0x38] sm:$0xff]  ;;  %v382_v37 = vld [vmem:[%s1101_s3 + $0x1d0] sm:$0xff]  ;;  %v344_v43 = vld [vmem:[%s1101_s3 + $0xa0] sm:$0xff] }
  0x3b   :  { %252 = vmatpush.msrb.mxu0 %v36_v47  ;;  %271 = vmatpush.msrb.mxu1 %v104_v48  ;;  %v347_v32 = vld [vmem:[%s1101_s3 + $0xb8] sm:$0xff]  ;;  %v362_v40 = vld [vmem:[%s1101_s3 + $0x130] sm:$0xff]  ;;  %v361_v44 = vld [vmem:[%s1101_s3 + $0x128] sm:$0xff] }
  0x3c   :  { %292 = vmatpush.msrb.mxu2 %v37_v49  ;;  %311 = vmatpush.msrb.mxu3 %v105_v50  ;;  %v363_v36 = vld [vmem:[%s1101_s3 + $0x138] sm:$0xff]  ;;  %v380_v45 = vld [vmem:[%s1101_s3 + $0x1c0] sm:$0xff]  ;;  %v325_v50 = vld [vmem:[%s1101_s3 + $0x8] sm:$0xff] }
  0x3d   :  { %196 = vmatmul.f32.vlgmr.msra.gmra.mxu1 %v21_v51  ;;  %236 = vmatmul.f32.vlgmr.msra.gmra.mxu3 %v21_v51  ;;  %v327_v42 = vld [vmem:[%s1101_s3 + $0x18] sm:$0xff]  ;;  %v360_v48 = vld [vmem:[%s1101_s3 + $0x120] sm:$0xff] }
  0x3e   :  { %253 = vmatpush.msrb.mxu0 %v32_v52  ;;  %272 = vmatpush.msrb.mxu1 %v100_v53  ;;  %v343_v47 = vld [vmem:[%s1101_s3 + $0x98] sm:$0xff]  ;;  %v378_v53 = vld [vmem:[%s1101_s3 + $0x1b0] sm:$0xff] }
  0x3f   :  { %293 = vmatpush.msrb.mxu2 %v33_v54  ;;  %312 = vmatpush.msrb.mxu3 %v101_v55  ;;  %v379_v49 = vld [vmem:[%s1101_s3 + $0x1b8] sm:$0xff]  ;;  %v324_v54 = vld [vmem:[%s1101_s3] sm:$0xff]  ;;  %v341_v55 = vld [vmem:[%s1101_s3 + $0x88] sm:$0xff] }
  0x40   :  { %254 = vmatpush.msrb.mxu0 %v28_v56  ;;  %273 = vmatpush.msrb.mxu1 %v96_v57  ;;  %v359_v52 = vld [vmem:[%s1101_s3 + $0x118] sm:$0xff]  ;;  %v358_v56 = vld [vmem:[%s1101_s3 + $0x110] sm:$0xff]  ;;  %v377_v57 = vld [vmem:[%s1101_s3 + $0x1a8] sm:$0xff] }
  0x41   :  { %294 = vmatpush.msrb.mxu2 %v29_v58  ;;  %313 = vmatpush.msrb.mxu3 %v97_v59  ;;  %v340_v58 = vld [vmem:[%s1101_s3 + $0x80] sm:$0xff]  ;;  %v357_v59 = vld [vmem:[%s1101_s3 + $0x108] sm:$0xff] }
  0x42   :  { %255 = vmatpush.msrb.mxu0 %v24_v60  ;;  %274 = vmatpush.msrb.mxu1 %v92_v61  ;;  %v376_v60 = vld [vmem:[%s1101_s3 + $0x1a0] sm:$0xff] }
  0x43   :  { %295 = vmatpush.msrb.mxu2 %v25_v62  ;;  %314 = vmatpush.msrb.mxu3 %v93_v63  ;;  %v356_v61 = vld [vmem:[%s1101_s3 + $0x100] sm:$0xff]  ;;  %v375_v62 = vld [vmem:[%s1101_s3 + $0x198] sm:$0xff]  ;;  %v374_v63 = vld [vmem:[%s1101_s3 + $0x190] sm:$0xff] }
  0x44   :  { %256 = vmatmul.f32.vlgmr.msrb.gmra.mxu0 %v20_v46  ;;  %296 = vmatmul.f32.vlgmr.msrb.gmra.mxu2 %v20_v46  ;;  %v326_v46 = vld [vmem:[%s1101_s3 + $0x10] sm:$0xff] }
  0x45   :  { %275 = vmatpush.msrb.mxu1 %v88_v0  ;;  %315 = vmatpush.msrb.mxu3 %v89_v1  ;;  %v373_v0 = vld [vmem:[%s1101_s3 + $0x188] sm:$0xff]  ;;  %v372_v1 = vld [vmem:[%s1101_s3 + $0x180] sm:$0xff] }
  0x46   :  { %276 = vmatmul.f32.vlgmr.msrb.gmra.mxu1 %v21_v51  ;;  %316 = vmatmul.f32.vlgmr.msrb.gmra.mxu3 %v21_v51  ;;  %v342_v51 = vld [vmem:[%s1101_s3 + $0x90] sm:$0xff] }
  0x47   :  { %392 = vmatpush.msra.mxu0 %v339_v2  ;;  %412 = vmatpush.msra.mxu1 %v355_v3  ;;  %v150_v2 = vld [vmem:[%s1103_s2] sm:$0xf] }
  0x48   :  { %432 = vmatpush.msra.mxu2 %v371_v4  ;;  %452 = vmatpush.msra.mxu3 %v387_v5  ;;  %v152_v3 = vperm.slane %v150_v2, 0 }
  0x49   :  { %393 = vmatpush.msra.mxu0 %v338_v6  ;;  %413 = vmatpush.msra.mxu1 %v354_v7  ;;  %v153_v7 = vperm.slane %v150_v2, 1 }
  0x4a   :  { %433 = vmatpush.msra.mxu2 %v370_v8  ;;  %453 = vmatpush.msra.mxu3 %v386_v9 }
  0x4b   :  { %394 = vmatpush.msra.mxu0 %v337_v10  ;;  %414 = vmatpush.msra.mxu1 %v353_v11 }
  0x4c   :  { %434 = vmatpush.msra.mxu2 %v369_v12  ;;  %454 = vmatpush.msra.mxu3 %v385_v13  ;;  %v154_v12 = vperm.slane %v150_v2, 2 }
  0x4d   :  { %395 = vmatpush.msra.mxu0 %v336_v14  ;;  %415 = vmatpush.msra.mxu1 %v352_v15 }
  0x4e   :  { %435 = vmatpush.msra.mxu2 %v368_v16  ;;  %455 = vmatpush.msra.mxu3 %v384_v17 }
  0x4f   :  { %396 = vmatpush.msra.mxu0 %v335_v18  ;;  %416 = vmatpush.msra.mxu1 %v351_v19 }
  0x50   :  { %436 = vmatpush.msra.mxu2 %v367_v20  ;;  %456 = vmatpush.msra.mxu3 %v383_v21  ;;  %v155_v20 = vperm.slane %v150_v2, 3 }
  0x51   :  { %397 = vmatpush.msra.mxu0 %v334_v22  ;;  %417 = vmatpush.msra.mxu1 %v350_v23 }
  0x52   :  { %437 = vmatpush.msra.mxu2 %v366_v24  ;;  %457 = vmatpush.msra.mxu3 %v382_v37 }
  0x53   :  { %398 = vmatpush.msra.mxu0 %v333_v25  ;;  %418 = vmatpush.msra.mxu1 %v349_v26 }
  0x54   :  { %438 = vmatpush.msra.mxu2 %v365_v27  ;;  %458 = vmatpush.msra.mxu3 %v381_v41  ;;  %v477_v27 = vld [vmem:[%s1102_s4] ss:$0 sm:$0xff] }
  0x55   :  { %399 = vmatpush.msra.mxu0 %v332_v28  ;;  %419 = vmatpush.msra.mxu1 %v348_v29 }
  0x56   :  { %439 = vmatpush.msra.mxu2 %v364_v30  ;;  %459 = vmatpush.msra.mxu3 %v380_v45 }
  0x57   :  { %400 = vmatpush.msra.mxu0 %v331_v31  ;;  %420 = vmatpush.msra.mxu1 %v347_v32 }
  0x58   :  { %440 = vmatpush.msra.mxu2 %v363_v36  ;;  %460 = vmatpush.msra.mxu3 %v379_v49 }
  0x59   :  { %401 = vmatpush.msra.mxu0 %v330_v33  ;;  %421 = vmatpush.msra.mxu1 %v346_v35 }
  0x5a   :  { %441 = vmatpush.msra.mxu2 %v362_v40  ;;  %461 = vmatpush.msra.mxu3 %v378_v53 }
  0x5b   :  { %402 = vmatpush.msra.mxu0 %v329_v34  ;;  %422 = vmatpush.msra.mxu1 %v345_v39 }
  0x5c   :  { %442 = vmatpush.msra.mxu2 %v361_v44  ;;  %462 = vmatpush.msra.mxu3 %v377_v57 }
  0x5d   :  { %403 = vmatpush.msra.mxu0 %v328_v38  ;;  %423 = vmatpush.msra.mxu1 %v344_v43 }
  0x5e   :  { %443 = vmatpush.msra.mxu2 %v360_v48  ;;  %463 = vmatpush.msra.mxu3 %v376_v60 }
  0x5f   :  { %404 = vmatpush.msra.mxu0 %v327_v42  ;;  %424 = vmatpush.msra.mxu1 %v343_v47 }
  0x60   :  { %444 = vmatpush.msra.mxu2 %v359_v52  ;;  %464 = vmatpush.msra.mxu3 %v375_v62 }
  0x61   :  { %405 = vmatpush.msra.mxu0 %v326_v46  ;;  %425 = vmatpush.msra.mxu1 %v342_v51 }
  0x62   :  { %445 = vmatpush.msra.mxu2 %v358_v56  ;;  %465 = vmatpush.msra.mxu3 %v374_v63 }
  0x63   :  { %406 = vmatpush.msra.mxu0 %v325_v50  ;;  %426 = vmatpush.msra.mxu1 %v341_v55 }
  0x64   :  { %446 = vmatpush.msra.mxu2 %v357_v59  ;;  %466 = vmatpush.msra.mxu3 %v373_v0 }
  0x65   :  { %407 = vmatpush.msra.mxu0 %v324_v54  ;;  %427 = vmatpush.msra.mxu1 %v340_v58 }
  0x66   :  { %447 = vmatpush.msra.mxu2 %v356_v61  ;;  %467 = vmatpush.msra.mxu3 %v372_v1 }
  0xb7   :  { %v177_v4 = vpop.f32.mrf.mxu0 }
  0xb8   :  { %v178_v5 = vadd.f32 %v177_v4, %v152_v3 }
  0xba   :  { %v197_v6 = vpop.f32.mrf.mxu1 }
  0xbb   :  { %v198_v8 = vadd.f32 %v197_v6, %v178_v5 }
  0xbd   :  { %v320_v9 = vmax.f32 %v198_v8, 0.0  ;;  %v217_v10 = vpop.f32.mrf.mxu2 }
  0xbe   :  { %v218_v11 = vadd.f32 %v217_v10, %v153_v7 }
  0xbf   :  { %408 = vmatmul.f32.vlgmr.msra.gmra.mxu0 %v320_v9 }
  0xc0   :  { %v237_v13 = vpop.f32.mrf.mxu3 }
  0xc1   :  { %v238_v14 = vadd.f32 %v237_v13, %v218_v11  ;;  %v257_v15 = vpop.f32.mrf.mxu0 }
  0xc2   :  { %v258_v16 = vadd.f32 %v257_v15, %v154_v12 }
  0xc3   :  { %v321_v17 = vmax.f32 %v238_v14, 0.0  ;;  %v277_v18 = vpop.f32.mrf.mxu1 }
  0xc4   :  { %v278_v19 = vadd.f32 %v277_v18, %v258_v16 }
  0xc5   :  { %428 = vmatmul.f32.vlgmr.msra.gmra.mxu1 %v321_v17 }
  0xc6   :  { %v322_v21 = vmax.f32 %v278_v19, 0.0 }
  0xc7   :  { %v297_v22 = vpop.f32.mrf.mxu2 }
  0xc8   :  { %v298_v23 = vadd.f32 %v297_v22, %v155_v20  ;;  %448 = vmatmul.f32.vlgmr.msra.gmra.mxu2 %v322_v21 }
  0xc9   :  { %v317_v24 = vpop.f32.mrf.mxu3 }
  0xca   :  { %v318_v25 = vadd.f32 %v317_v24, %v298_v23 }
  0xcc   :  { %v323_v26 = vmax.f32 %v318_v25, 0.0 }
  0xce   :  { %468 = vmatmul.f32.vlgmr.msra.gmra.mxu3 %v323_v26 }
 0x13c   :  { %v409_v28 = vpop.f32.mrf.mxu0 }
 0x13d   :  { %v410_v29 = vadd.f32 %v477_v27, %v409_v28 }
 0x142   :  { %v429_v30 = vpop.f32.mrf.mxu1 }
 0x143   :  { %v430_v32 = vadd.f32 %v429_v30, %v410_v29 }
 0x14b   :  { %v449_v31 = vpop.f32.mrf.mxu2 }
 0x14c   :  { %v450_v33 = vadd.f32 %v449_v31, %v430_v32 }
 0x151   :  { %v469_v34 = vpop.f32.mrf.mxu3 }
 0x152   :  { %v470_v35 = vadd.f32 %v469_v34, %v450_v33 }
 0x154   :  { %472 = vst [vmem:[%s1104_s5] sm:$0xff] %v470_v35 }

</bundles_post_ra>
